<compile_context>
chip_gen: v6e
topology: v6e:2x2x1
jax: 0.10.0
libtpu: 0.0.40
codegen_flags: <defaults>
</compile_context>

<pallas_src>
import functools

import jax
import jax.numpy as jnp
from jax.experimental import pallas as pl
from jax.experimental.pallas import tpu as pltpu


def _round_up(x, m):
    return (x + m - 1) // m * m


def _prelu(x, alpha):
    # PReLU with a single learnable parameter per conv (PyTorch default).
    return jnp.where(x >= 0, x, alpha * x)


def _nonlocal_attn_kernel(x_ref, xt_ref, wf_ref, bf_ref, af_ref, out_ref, *,
                          seg_e, c):
    """One (batch, p-tile) grid step.

    x_ref  : (1, C, HW)  full channel-first feature map (keys / assembly)
    xt_ref : (1, C, TP)  p-tile of the same feature map (queries)
    wf_ref : (CT, C)     fused 1x1-conv weights, rows = [match1|match2|assembly]
    bf_ref : (CT, 1)     fused biases        (zero in padding rows)
    af_ref : (CT, 1)     per-row PReLU alpha (irrelevant in padding rows)
    out_ref: (1, C, TP)  channel-first output tile
    """
    x_full = x_ref[0]                         # (C, HW)
    x_tile = xt_ref[0]                        # (C, TP)

    w = wf_ref[...]
    b = bf_ref[...]
    a = af_ref[...]

    # ---- fused 1x1 convs (matmuls) + per-row PReLU --------------------------
    # query embedding, only on this p-tile
    z1 = jnp.dot(w[:seg_e], x_tile, preferred_element_type=jnp.float32) + b[:seg_e]
    e1 = jnp.where(z1 >= 0, z1, a[:seg_e] * z1)               # (seg_e, TP)

    # key + assembly embeddings over the full spatial extent (one fused matmul)
    z2 = jnp.dot(w[seg_e:], x_full, preferred_element_type=jnp.float32) + b[seg_e:]
    emb = jnp.where(z2 >= 0, z2, a[seg_e:] * z2)              # (seg_e + seg_a, HW)
    e2 = emb[:seg_e]                                          # (seg_e, HW)
    asm = emb[seg_e:seg_e + c]                                # (C, HW)

    # ---- scores: s_t[q, p] = <e2[:, q], e1[:, p]> ---------------------------
    # Padding rows of e1/e2 are exactly zero (zero weight + zero bias, PReLU(0)=0),
    # so the extra K rows are inert.  Only the tiny (seg_e, HW) operand is
    # transposed; the (HW, TP) score stays in its natural layout.
    e2_t = e2.T                                               # (HW, seg_e)
    s_t = jnp.dot(e2_t.astype(jnp.bfloat16), e1.astype(jnp.bfloat16),
                  preferred_element_type=jnp.float32)         # (HW, TP)

    # ---- softmax over q (axis 0), normalization deferred --------------------
    m = jnp.max(s_t, axis=0, keepdims=True)                   # (1, TP)
    p = jnp.exp(s_t - m)                                      # (HW, TP)
    l = jnp.sum(p, axis=0, keepdims=True)                     # (1, TP)

    # ---- aggregation, then scale by 1/l (EUP approx reciprocal) -------------
    u = jnp.dot(asm.astype(jnp.bfloat16), p.astype(jnp.bfloat16),
                preferred_element_type=jnp.float32)           # (C, TP)
    out_ref[0] = (u * pl.reciprocal(l, approx=True)).astype(out_ref.dtype)


def _pick_p_tile(hw, n):
    """Largest 128-multiple tile (<=1024) dividing HW; full HW otherwise."""
    tp = hw
    for cand in (1024, 512, 256, 128):
        if hw % cand == 0:
            tp = cand
            break
    # v7x has two TensorCores: make sure the parallel grid has >= 2 steps when possible.
    if n * (hw // tp) < 2 and tp % 256 == 0 and hw % (tp // 2) == 0:
        tp //= 2
    return tp


def nonlocal_attention(x_nchw, params):
    """x_nchw: (N, C, H, W) float32. Returns (N, C, H, W)."""
    N, C, H, W = x_nchw.shape
    HW = H * W
    w1, b1, a1, w2, b2, a2, w3, b3, a3 = params
    Cr = w1.shape[0]

    # channel-first: NCHW -> (N, C, HW) is a pure reshape (no transpose).
    x = x_nchw.reshape(N, C, HW)

    # Fused, sublane-padded parameter block: rows = [match1 | match2 | assembly].
    seg_e = _round_up(Cr, 8)
    seg_a = _round_up(C, 8)
    CT = 2 * seg_e + seg_a

    wf = jnp.zeros((CT, C), jnp.float32)
    wf = wf.at[0:Cr].set(w1)
    wf = wf.at[seg_e:seg_e + Cr].set(w2)
    wf = wf.at[2 * seg_e:2 * seg_e + C].set(w3)

    bf = jnp.zeros((CT, 1), jnp.float32)
    bf = bf.at[0:Cr, 0].set(b1.reshape(-1))
    bf = bf.at[seg_e:seg_e + Cr, 0].set(b2.reshape(-1))
    bf = bf.at[2 * seg_e:2 * seg_e + C, 0].set(b3.reshape(-1))

    af = jnp.ones((CT, 1), jnp.float32)
    af = af.at[0:seg_e].set(a1[0, 0])
    af = af.at[seg_e:2 * seg_e].set(a2[0, 0])
    af = af.at[2 * seg_e:].set(a3[0, 0])

    TP = _pick_p_tile(HW, N)
    grid = (N, HW // TP)

    # Scoped-VMEM budget for the per-step working set (the score tile dominates).
    score_bytes = HW * TP * (4 + 4 + 2)               # s_t f32, exp f32, exp bf16
    io_bytes = 4 * 2 * (C * HW + 2 * C * TP)          # double-buffered x / out blocks
    emb_bytes = 4 * 3 * CT * HW
    vmem_limit = int(min(64 << 20,
                         max(32 << 20, 2 * (score_bytes + io_bytes + emb_bytes))))

    kernel = functools.partial(_nonlocal_attn_kernel, seg_e=seg_e, c=C)

    out = pl.pallas_call(
        kernel,
        out_shape=jax.ShapeDtypeStruct((N, C, HW), x.dtype),
        grid_spec=pltpu.PrefetchScalarGridSpec(
            num_scalar_prefetch=0,
            grid=grid,
            in_specs=[
                pl.BlockSpec((1, C, HW), lambda n, t: (n, 0, 0)),   # keys / assembly
                pl.BlockSpec((1, C, TP), lambda n, t: (n, 0, t)),   # query p-tile
                pl.BlockSpec((CT, C), lambda n, t: (0, 0)),
                pl.BlockSpec((CT, 1), lambda n, t: (0, 0)),
                pl.BlockSpec((CT, 1), lambda n, t: (0, 0)),
            ],
            out_specs=pl.BlockSpec((1, C, TP), lambda n, t: (n, 0, t)),
        ),
        compiler_params=pltpu.CompilerParams(
            dimension_semantics=("parallel", "parallel"),
            vmem_limit_bytes=vmem_limit),
    )(x, x, wf, bf, af)

    # (N, C, HW) -> NCHW is again a pure reshape.
    return out.reshape(N, C, H, W)


def make_params(key, channel, reduction):
    """Deterministic synthetic parameters matching the module's __init__ shapes."""
    cr = channel // reduction
    k = jax.random.split(key, 6)
    scale = 0.1
    w1 = scale * jax.random.normal(k[0], (cr, channel), jnp.float32)       # conv_match1 1x1
    b1 = scale * jax.random.normal(k[1], (1, cr), jnp.float32)
    w2 = scale * jax.random.normal(k[2], (cr, channel), jnp.float32)       # conv_match2 1x1
    b2 = scale * jax.random.normal(k[3], (1, cr), jnp.float32)
    w3 = scale * jax.random.normal(k[4], (channel, channel), jnp.float32)  # conv_assembly 1x1
    b3 = scale * jax.random.normal(k[5], (1, channel), jnp.float32)
    a1 = jnp.full((1, 1), 0.25, jnp.float32)  # PReLU default init
    a2 = jnp.full((1, 1), 0.25, jnp.float32)
    a3 = jnp.full((1, 1), 0.25, jnp.float32)
    return (w1, b1, a1, w2, b2, a2, w3, b3, a3)


def reference(x_nchw, params):
    """Pure-JAX f32 reference of the PyTorch forward (input_ref=None path)."""
    w1, b1, a1, w2, b2, a2, w3, b3, a3 = params
    N, C, H, W = x_nchw.shape
    x = jnp.transpose(x_nchw, (0, 2, 3, 1)).reshape(N, H * W, C)
    e1 = _prelu(x @ w1.T + b1, a1[0, 0])
    e2 = _prelu(x @ w2.T + b2, a2[0, 0])
    asm = _prelu(x @ w3.T + b3, a3[0, 0])
    score = jax.nn.softmax(jnp.einsum('npc,nqc->npq', e1, e2), axis=-1)
    out = jnp.einsum('npq,nqc->npc', score, asm)
    return jnp.transpose(out.reshape(N, H, W, C), (0, 3, 1, 2))


if __name__ == "__main__":
    key = jax.random.PRNGKey(0)
    kx, kp = jax.random.split(key)

    N, C, H, W = 2, 4, 16, 16         # small shapes; reduction=2 -> embed channels = 2
    reduction = 2
    x = jax.random.normal(kx, (N, C, H, W), jnp.float32)
    params = make_params(kp, C, reduction)

    y = jax.jit(nonlocal_attention)(x, params)
    y = jax.block_until_ready(y)

    y_ref = reference(x, params)
    assert y.shape == (N, C, H, W)
    # bf16 MXU inputs + approx reciprocal => relaxed (flash-style) tolerance.
    assert jnp.allclose(y, y_ref, atol=1e-2, rtol=1e-2), "mismatch vs reference"

    print("KERNEL_OK")
</pallas_src>

<mosaic_0001>
module attributes {stable_mosaic.version = 11 : i64} {
  func.func @_nonlocal_attn_kernel(%arg0: i32, %arg1: i32, %arg2: memref<1x4x256xf32, #tpu.memory_space<vmem>>, %arg3: memref<1x4x256xf32, #tpu.memory_space<vmem>>, %arg4: memref<24x4xf32, #tpu.memory_space<vmem>>, %arg5: memref<24x1xf32, #tpu.memory_space<vmem>>, %arg6: memref<24x1xf32, #tpu.memory_space<vmem>>, %arg7: memref<1x4x256xf32, #tpu.memory_space<vmem>>) attributes {dimension_semantics = [#tpu.dimension_semantics<parallel>, #tpu.dimension_semantics<parallel>], iteration_bounds = array<i64: 2, 1>, scalar_prefetch = 0 : i64, scratch_operands = 0 : i64, tpu.core_type = #tpu.core_type<tc>, window_params = [{transform_indices = @transform_0, window_bounds = array<i64: 1, 4, 256>}, {transform_indices = @transform_1, window_bounds = array<i64: 1, 4, 256>}, {pipeline_mode = #tpu.pipeline_mode<synchronous>, transform_indices = @transform_2, window_bounds = array<i64: 24, 4>}, {pipeline_mode = #tpu.pipeline_mode<synchronous>, transform_indices = @transform_3, window_bounds = array<i64: 24, 1>}, {pipeline_mode = #tpu.pipeline_mode<synchronous>, transform_indices = @transform_4, window_bounds = array<i64: 24, 1>}, {transform_indices = @transform_5, window_bounds = array<i64: 1, 4, 256>}]} {
    %c0 = arith.constant 0 : index
    %c0_0 = arith.constant 0 : index
    %c0_1 = arith.constant 0 : index
    %0 = vector.load %arg2[%c0, %c0_0, %c0_1] : memref<1x4x256xf32, #tpu.memory_space<vmem>>, vector<1x4x256xf32>
    %1 = vector.shape_cast %0 : vector<1x4x256xf32> to vector<4x256xf32>
    %c0_2 = arith.constant 0 : index
    %c0_3 = arith.constant 0 : index
    %c0_4 = arith.constant 0 : index
    %2 = vector.load %arg3[%c0_2, %c0_3, %c0_4] : memref<1x4x256xf32, #tpu.memory_space<vmem>>, vector<1x4x256xf32>
    %3 = vector.shape_cast %2 : vector<1x4x256xf32> to vector<4x256xf32>
    %c0_5 = arith.constant 0 : index
    %c0_6 = arith.constant 0 : index
    %4 = vector.load %arg4[%c0_5, %c0_6] : memref<24x4xf32, #tpu.memory_space<vmem>>, vector<24x4xf32>
    %c0_7 = arith.constant 0 : index
    %c0_8 = arith.constant 0 : index
    %5 = vector.load %arg5[%c0_7, %c0_8] : memref<24x1xf32, #tpu.memory_space<vmem>>, vector<24x1xf32>
    %c0_9 = arith.constant 0 : index
    %c0_10 = arith.constant 0 : index
    %6 = vector.load %arg6[%c0_9, %c0_10] : memref<24x1xf32, #tpu.memory_space<vmem>>, vector<24x1xf32>
    %7 = vector.extract_strided_slice %4 {offsets = [0, 0], sizes = [8, 4], strides = [1, 1]} : vector<24x4xf32> to vector<8x4xf32>
    %cst = arith.constant dense<0.000000e+00> : vector<8x256xf32>
    %8 = tpu.matmul %7, %3, %cst {dimension_numbers = #tpu.dot_dimension_numbers<[1], [0], [0], [1], [0, 0, 1, 1], [], []>} : vector<8x4xf32>, vector<4x256xf32>, vector<8x256xf32> -> vector<8x256xf32>
    %9 = vector.extract_strided_slice %5 {offsets = [0, 0], sizes = [8, 1], strides = [1, 1]} : vector<24x1xf32> to vector<8x1xf32>
    %10 = vector.broadcast %9 : vector<8x1xf32> to vector<8x256xf32>
    %11 = arith.addf %8, %10 : vector<8x256xf32>
    %cst_11 = arith.constant 0.000000e+00 : f32
    %12 = vector.broadcast %cst_11 : f32 to vector<8x256xf32>
    %13 = arith.cmpf oge, %11, %12 : vector<8x256xf32>
    %14 = vector.extract_strided_slice %6 {offsets = [0, 0], sizes = [8, 1], strides = [1, 1]} : vector<24x1xf32> to vector<8x1xf32>
    %15 = vector.broadcast %14 : vector<8x1xf32> to vector<8x256xf32>
    %16 = arith.mulf %15, %11 : vector<8x256xf32>
    %17 = arith.select %13, %11, %16 : vector<8x256xi1>, vector<8x256xf32>
    %18 = vector.extract_strided_slice %4 {offsets = [8, 0], sizes = [16, 4], strides = [1, 1]} : vector<24x4xf32> to vector<16x4xf32>
    %cst_12 = arith.constant dense<0.000000e+00> : vector<16x256xf32>
    %19 = tpu.matmul %18, %1, %cst_12 {dimension_numbers = #tpu.dot_dimension_numbers<[1], [0], [0], [1], [0, 0, 1, 1], [], []>} : vector<16x4xf32>, vector<4x256xf32>, vector<16x256xf32> -> vector<16x256xf32>
    %20 = vector.extract_strided_slice %5 {offsets = [8, 0], sizes = [16, 1], strides = [1, 1]} : vector<24x1xf32> to vector<16x1xf32>
    %21 = vector.broadcast %20 : vector<16x1xf32> to vector<16x256xf32>
    %22 = arith.addf %19, %21 : vector<16x256xf32>
    %cst_13 = arith.constant 0.000000e+00 : f32
    %23 = vector.broadcast %cst_13 : f32 to vector<16x256xf32>
    %24 = arith.cmpf oge, %22, %23 : vector<16x256xf32>
    %25 = vector.extract_strided_slice %6 {offsets = [8, 0], sizes = [16, 1], strides = [1, 1]} : vector<24x1xf32> to vector<16x1xf32>
    %26 = vector.broadcast %25 : vector<16x1xf32> to vector<16x256xf32>
    %27 = arith.mulf %26, %22 : vector<16x256xf32>
    %28 = arith.select %24, %22, %27 : vector<16x256xi1>, vector<16x256xf32>
    %29 = vector.extract_strided_slice %28 {offsets = [0, 0], sizes = [8, 256], strides = [1, 1]} : vector<16x256xf32> to vector<8x256xf32>
    %30 = vector.extract_strided_slice %28 {offsets = [8, 0], sizes = [4, 256], strides = [1, 1]} : vector<16x256xf32> to vector<4x256xf32>
    %31 = tpu.transpose %29, [1, 0] : vector<8x256xf32> -> vector<256x8xf32>
    %32 = arith.truncf %31 : vector<256x8xf32> to vector<256x8xbf16>
    %33 = arith.truncf %17 : vector<8x256xf32> to vector<8x256xbf16>
    %cst_14 = arith.constant dense<0.000000e+00> : vector<256x256xf32>
    %34 = tpu.matmul %32, %33, %cst_14 {dimension_numbers = #tpu.dot_dimension_numbers<[1], [0], [0], [1], [0, 0, 1, 1], [], []>} : vector<256x8xbf16>, vector<8x256xbf16>, vector<256x256xf32> -> vector<256x256xf32>
    %cst_15 = arith.constant dense<0xFF800000> : vector<256xf32>
    %35 = vector.multi_reduction <maximumf>, %34, %cst_15 [0] : vector<256x256xf32> to vector<256xf32>
    %36 = vector.shape_cast %35 : vector<256xf32> to vector<1x256xf32>
    %37 = vector.broadcast %36 : vector<1x256xf32> to vector<256x256xf32>
    %38 = arith.subf %34, %37 : vector<256x256xf32>
    %39 = math.exp %38 : vector<256x256xf32>
    %cst_16 = arith.constant dense<0.000000e+00> : vector<256xf32>
    %40 = vector.multi_reduction <add>, %39, %cst_16 [0] : vector<256x256xf32> to vector<256xf32>
    %41 = vector.shape_cast %40 : vector<256xf32> to vector<1x256xf32>
    %42 = arith.truncf %30 : vector<4x256xf32> to vector<4x256xbf16>
    %43 = arith.truncf %39 : vector<256x256xf32> to vector<256x256xbf16>
    %cst_17 = arith.constant dense<0.000000e+00> : vector<4x256xf32>
    %44 = tpu.matmul %42, %43, %cst_17 {dimension_numbers = #tpu.dot_dimension_numbers<[1], [0], [0], [1], [0, 0, 1, 1], [], []>} : vector<4x256xbf16>, vector<256x256xbf16>, vector<4x256xf32> -> vector<4x256xf32>
    %45 = tpu.reciprocal %41 {approx = true} : vector<1x256xf32> -> vector<1x256xf32>
    %46 = vector.broadcast %45 : vector<1x256xf32> to vector<4x256xf32>
    %47 = arith.mulf %44, %46 : vector<4x256xf32>
    %c0_18 = arith.constant 0 : index
    %c0_19 = arith.constant 0 : index
    %c0_20 = arith.constant 0 : index
    %48 = vector.load %arg7[%c0_18, %c0_19, %c0_20] : memref<1x4x256xf32, #tpu.memory_space<vmem>>, vector<1x4x256xf32>
    %49 = vector.shape_cast %48 : vector<1x4x256xf32> to vector<4x256xf32>
    %50 = vector.shape_cast %47 : vector<4x256xf32> to vector<1x4x256xf32>
    tpu.vector_store %arg7[%c0_18, %c0_19, %c0_20], %50 {strides = array<i32>} : memref<1x4x256xf32, #tpu.memory_space<vmem>>, vector<1x4x256xf32>,
    return
  }
  func.func @transform_0(%arg0: i32, %arg1: i32) -> (i32, i32, i32) {
    %c0_i32 = arith.constant 0 : i32
    %c0_i32_0 = arith.constant 0 : i32
    %c0_i32_1 = arith.constant 0 : i32
    return %arg0, %c0_i32, %c0_i32_0 : i32, i32, i32
  }
  func.func @transform_1(%arg0: i32, %arg1: i32) -> (i32, i32, i32) {
    %c0_i32 = arith.constant 0 : i32
    %c0_i32_0 = arith.constant 0 : i32
    return %arg0, %c0_i32, %arg1 : i32, i32, i32
  }
  func.func @transform_2(%arg0: i32, %arg1: i32) -> (i32, i32) {
    %c0_i32 = arith.constant 0 : i32
    %c0_i32_0 = arith.constant 0 : i32
    %c0_i32_1 = arith.constant 0 : i32
    return %c0_i32, %c0_i32_0 : i32, i32
  }
  func.func @transform_3(%arg0: i32, %arg1: i32) -> (i32, i32) {
    %c0_i32 = arith.constant 0 : i32
    %c0_i32_0 = arith.constant 0 : i32
    %c0_i32_1 = arith.constant 0 : i32
    return %c0_i32, %c0_i32_0 : i32, i32
  }
  func.func @transform_4(%arg0: i32, %arg1: i32) -> (i32, i32) {
    %c0_i32 = arith.constant 0 : i32
    %c0_i32_0 = arith.constant 0 : i32
    %c0_i32_1 = arith.constant 0 : i32
    return %c0_i32, %c0_i32_0 : i32, i32
  }
  func.func @transform_5(%arg0: i32, %arg1: i32) -> (i32, i32, i32) {
    %c0_i32 = arith.constant 0 : i32
    %c0_i32_0 = arith.constant 0 : i32
    return %arg0, %c0_i32, %arg1 : i32, i32, i32
  }
}

</mosaic_0001>

<bundles_post_ra>
// kernel: nonlocal_attention.1
= control target key start
LH: loop header
LB: loop body
LE: loop exit
PB: predicated region body
PF: predicated region fallthrough
CT: control target
= control target key end

     0   :  { %s1626_s18 = smov 0   ;;  %s1628_s19 = smov 0   ;;  %s2262_s0 = inlined_call_operand.vmem [shape: f32[2,4,256], index: 0, kind: input, shape index: {}, may-alias: {0,1}]   ;;  %s2263_s1 = inlined_call_operand.vmem [shape: f32[2,4,256], index: 1, kind: input, shape index: {}, may-alias: {0,1}]   ;;  %s2264_s2 = inlined_call_operand.vmem [shape: f32[24,4], index: 2, kind: input, shape index: {}]   ;;  %s2265_s3 = inlined_call_operand.vmem [shape: f32[24,1], index: 3, kind: input, shape index: {}]   ;;  %s2266_s4 = inlined_call_operand.vmem [shape: f32[24,1], index: 4, kind: input, shape index: {}]   ;;  %s2267_s5 = inlined_call_operand.vmem [shape: f32[2,4,256], index: 5, kind: output, shape index: {}]  }
   0x1   :  { %s1630_s20 = smov 0  }
   0x2 LB: > { %s27_s21 = sadd.s32 1, %s1588_s19  ;;  %p1372_p0 = scmp.ge.s32.totalorder %s1592_s20, 1  ;;  %s1592_s20 = sphi %s1630_s20, %s15_s20   ;;  %s1588_s19 = sphi %s1628_s19, %s2337_s19   ;;  %s1584_s18 = sphi %s1626_s18, %s2336_s18  }
   0x3   : > { %p29_p1 = scmp.ge.s32.totalorder %s27_s21, 2  ;;  %p218_p2 = scmp.lt.s32.totalorder %s1592_s20, 3 }
   0x5   : > { %s2339_s21 = smov (%p29_p1, %s27_s21), 0  ;;  %p219_p3 = pnand %p1372_p0, %p218_p2 }
   0x7   : > { %222 = sbr.rel (%p219_p3) target bundleno = 1017 (0x3f9), region = 40 }
   0xc   : > { %p259_p4 = scmp.lt.s32.totalorder %s1584_s18, 1  ;;  %v1594_v0 = vmov 0.0   ;;  %v290_v1 = vld [vmem:[%s2265_s3] sm:$0xff]  ;;  %v291_v2 = vld [vmem:[%s2265_s3 + $0x8] sm:$0xff]  ;;  %v1595_v3 = vmov 0   ;;  %vm307_vm0 = vcmask 1043456  }
   0xd   : > { %376 = vmatprep.mubr.f32.mxu1 %v1594_v0  ;;  %1435 = vset.pattern.permute.xlu1 %v1595_v3  ;;  %v293_v4 = vld [vmem:[%s2266_s4] sm:$0xff]  ;;  %v294_v5 = vld [vmem:[%s2266_s4 + $0x8] sm:$0xff]  ;;  %vm303_vm1 = vcmask 31744   ;;  %v289_v12 = vld [vmem:[%s2264_s2 + $0x10] sm:$0xff]  ;;  %vm597_vm6 = vcmask 64512  }
   0xe   : > { %s2341_s18 = smov (!%p259_p4, %s1584_s18), 1  ;;  %1434 = vset.pattern.permute.xlu0 %v1595_v3  ;;  %298 = vperm.xlu1 %1435, %v290_v1   ;;  %v287_v10 = vld [vmem:[%s2264_s2] sm:$0xff]  ;;  %v288_v11 = vld [vmem:[%s2264_s2 + $0x8] sm:$0xff]  ;;  %v295_v36 = vld [vmem:[%s2266_s4 + $0x10] sm:$0xff] }
   0xf   : > { %396 = vperm.xlu0 %1434, %v291_v2   ;;  %s1652_s26 = sshll.u32 %s2341_s18, 3  ;;  %684 = vmatprep.mubr.bf16.mxu0 %v1595_v3  ;;  %v292_v37 = vld [vmem:[%s2265_s3 + $0x10] sm:$0xff] }
  0x10   : > { %s263_s8 = scalar_lea.vmem %s2262_s0, %s1652_s26  ;;  %s272_s11 = scalar_lea.vmem %s2263_s1, %s1652_s26 }
  0x11   : > { %v285_v6 = vld [vmem:[%s263_s8] sm:$0xff]  ;;  %s282_s28 = scalar_lea.vmem %s2267_s5, %s1652_s26 }
  0x12   : > { %v286_v7 = vld [vmem:[%s272_s11] sm:$0xff]  ;;  %v405_v9 = vcombine.high %v285_v6, %v285_v6  ;;  %387 = vperm.xlu1 %1435, %v293_v4  }
  0x13   : > { %v302_v8 = vcombine.high %v286_v7, %v286_v7  ;;  %499 = vperm.xlu0 %1434, %v294_v5  }
  0x15   : > { %1379 = vmatprep.subr.msk.mxu1 %vm307_vm0, %v302_v8 }
  0x16   : > { %1380 = vmatpush1.msk.msra.mxu1 %vm307_vm0, %v286_v7 }
  0x17   : > { %1381 = vmatmul.mubr.msk.f32.vlgmr.msra.gmra.mxu1 %vm303_vm1, %v287_v10  ;;  %1382 = vmatprep.subr.msk.mxu1 %vm307_vm0, %v405_v9 }
  0x18   : > { %1383 = vmatpush1.msk.msra.mxu1 %vm307_vm0, %v285_v6  ;;  %480 = vmatprep.mubr.f32.mxu1 %v1594_v0 }
  0x1b   : > { %1384 = vmatmul.mubr.msk.f32.vlgmr.msra.gmra.mxu1 %vm303_vm1, %v288_v11 }
  0x1c   : > { %486 = vmatprep.mubr.f32.mxu1 %v1594_v0 }
  0x1f   : > { %1385 = vmatmul.mubr.msk.f32.gmra.mxu1 %vm303_vm1, %v289_v12 }
  0x89   : > { %v299_v13 = vpop.permute.xlu1 %298 }
  0x8a   : > { %v397_v14 = vpop.permute.xlu0 %396 }
  0x8d   : > { %v388_v16 = vpop.permute.xlu1 %387 }
  0x8e   : > { %v500_v25 = vpop.permute.xlu0 %499 }
  0xd7   : > { %v378_v15 = vpop.f32.mrf.mxu1 }
  0xd8   : > { %v379_v17 = vadd.f32 %v378_v15, %v299_v13 }
  0xd9   : > { %v380_v18 = vpop.f32.mrf.mxu1 }
  0xda   : > { %v390_v19 = vmul.f32 %v388_v16, %v379_v17  ;;  %v381_v20 = vadd.f32 %v380_v18, %v299_v13  ;;  %vm383_vm2 = vcmp.ge.f32.partialorder %v379_v17, 0.0 }
  0xdb   : > { %v482_v21 = vpop.f32.mrf.mxu1 }
  0xdc   : > { %v391_v22 = vmul.f32 %v388_v16, %v381_v20  ;;  %v483_v23 = vadd.f32 %v482_v21, %v397_v14  ;;  %vm384_vm3 = vcmp.ge.f32.partialorder %v381_v20, 0.0  ;;  %v392_v24 = vsel %vm383_vm2, %v379_v17, %v390_v19 }
  0xdd   : > { %v484_v26 = vpop.f32.mrf.mxu1  ;;  %v595_v27 = vpack.c.bf16 %v392_v24, %v392_v24 }
  0xde   : > { %v507_v28 = vmul.f32 %v500_v25, %v483_v23  ;;  %v485_v29 = vadd.f32 %v484_v26, %v397_v14  ;;  %v393_v30 = vsel %vm384_vm3, %v381_v20, %v391_v22  ;;  %vm493_vm4 = vcmp.ge.f32.partialorder %v483_v23, 0.0 }
  0xdf   : > { %v596_v31 = vpack.c.bf16 %v393_v30, %v393_v30  ;;  %v647_v34 = vsel %vm307_vm0, %v595_v27, 0  ;;  %v488_v18 = vpop.f32.mrf.mxu1 }
  0xe0   : > { %v508_v32 = vmul.f32 %v500_v25, %v485_v29  ;;  %v511_v33 = vsel %vm493_vm4, %v483_v23, %v507_v28  ;;  %vm494_vm5 = vcmp.ge.f32.partialorder %v485_v29, 0.0 }
  0xe1   : > { %1386 = vmatprep.subr.msk.bf16.mxu0 %vm307_vm0, %v596_v31  ;;  %515 = vxpose.xlu0.b32.start.end [1/1] (short) %v511_v33, 128  ;;  %v490_v20 = vpop.f32.mrf.mxu1 }
  0xe2   : > { %667 = vmatpush1.bf16.msra.mxu0 %v647_v34  ;;  %v512_v35 = vsel %vm494_vm5, %v485_v29, %v508_v32 }
  0xe3   : > { %547 = vxpose.xlu1.b32.start.end [1/1] (short) %v512_v35, 128 }
 0x13d   : > { %504 = vperm.xlu1 %1435, %v295_v36  }
 0x146   : > { %401 = vperm.xlu0 %1434, %v292_v37  }
 0x15d   : > { %v531_v38 = vpop.trf.xlu0 }
 0x15f   : > { %v563_v41 = vpop.trf.xlu1 }
 0x161   : > { %v532_v39 = vpop.trf.xlu0 }
 0x162   : > { %v579_v40 = vpack.c.bf16 %v532_v39, %v531_v38 }
 0x163   : > { %v564_v44 = vpop.trf.xlu1 }
 0x164   : > { %1387 = vmatmul.mubr.msk.bf16.vlgmr.msra.gmra.mxu0 %vm597_vm6, %v579_v40  ;;  %v587_v10 = vpack.c.bf16 %v564_v44, %v563_v41 }
 0x165   : > { %v533_v42 = vpop.trf.xlu0  ;;  %694 = vmatprep.mubr.bf16.mxu0 %v1595_v3 }
 0x167   : > { %v565_v47 = vpop.trf.xlu1 }
 0x169   : > { %v534_v43 = vpop.trf.xlu0 }
 0x16a   : > { %v580_v45 = vpack.c.bf16 %v534_v43, %v533_v42 }
 0x16b   : > { %v566_v51 = vpop.trf.xlu1 }
 0x16c   : > { %1388 = vmatmul.mubr.msk.bf16.gmra.mxu0 %vm597_vm6, %v580_v45  ;;  %v588_v12 = vpack.c.bf16 %v566_v51, %v565_v47 }
 0x16d   : > { %v535_v46 = vpop.trf.xlu0  ;;  %704 = vmatprep.mubr.bf16.mxu0 %v1595_v3 }
 0x16f   : > { %v567_v54 = vpop.trf.xlu1 }
 0x171   : > { %v536_v48 = vpop.trf.xlu0 }
 0x172   : > { %v581_v49 = vpack.c.bf16 %v536_v48, %v535_v46 }
 0x173   : > { %v568_v57 = vpop.trf.xlu1 }
 0x174   : > { %1389 = vmatmul.mubr.msk.bf16.gmra.mxu0 %vm597_vm6, %v581_v49  ;;  %v589_v15 = vpack.c.bf16 %v568_v57, %v567_v54 }
 0x175   : > { %v537_v50 = vpop.trf.xlu0  ;;  %714 = vmatprep.mubr.bf16.mxu0 %v1595_v3 }
 0x177   : > { %v569_v60 = vpop.trf.xlu1 }
 0x179   : > { %v538_v52 = vpop.trf.xlu0 }
 0x17a   : > { %v582_v53 = vpack.c.bf16 %v538_v52, %v537_v50 }
 0x17b   : > { %v570_v0 = vpop.trf.xlu1 }
 0x17c   : > { %1390 = vmatmul.mubr.msk.bf16.gmra.mxu0 %vm597_vm6, %v582_v53  ;;  %v590_v17 = vpack.c.bf16 %v570_v0, %v569_v60 }
 0x17d   : > { %v539_v55 = vpop.trf.xlu0  ;;  %724 = vmatprep.mubr.bf16.mxu0 %v1595_v3 }
 0x17f   : > { %v571_v4 = vpop.trf.xlu1 }
 0x181   : > { %v540_v56 = vpop.trf.xlu0 }
 0x182   : > { %v583_v58 = vpack.c.bf16 %v540_v56, %v539_v55 }
 0x183   : > { %v572_v7 = vpop.trf.xlu1 }
 0x184   : > { %1391 = vmatmul.mubr.msk.bf16.gmra.mxu0 %vm597_vm6, %v583_v58  ;;  %v591_v22 = vpack.c.bf16 %v572_v7, %v571_v4 }
 0x185   : > { %v541_v59 = vpop.trf.xlu0  ;;  %734 = vmatprep.mubr.bf16.mxu0 %v1595_v3 }
 0x187   : > { %v573_v9 = vpop.trf.xlu1 }
 0x189   : > { %v542_v61 = vpop.trf.xlu0 }
 0x18a   : > { %v584_v62 = vpack.c.bf16 %v542_v61, %v541_v59 }
 0x18b   : > { %v574_v11 = vpop.trf.xlu1 }
 0x18c   : > { %1392 = vmatmul.mubr.msk.bf16.gmra.mxu0 %vm597_vm6, %v584_v62  ;;  %v592_v31 = vpack.c.bf16 %v574_v11, %v573_v9 }
 0x18d   : > { %v543_v63 = vpop.trf.xlu0  ;;  %744 = vmatprep.mubr.bf16.mxu0 %v1595_v3 }
 0x18f   : > { %v575_v13 = vpop.trf.xlu1 }
 0x191   : > { %v544_v1 = vpop.trf.xlu0 }
 0x192   : > { %v585_v2 = vpack.c.bf16 %v544_v1, %v543_v63 }
 0x193   : > { %v576_v14 = vpop.trf.xlu1 }
 0x194   : > { %1393 = vmatmul.mubr.msk.bf16.gmra.mxu0 %vm597_vm6, %v585_v2  ;;  %v593_v32 = vpack.c.bf16 %v576_v14, %v575_v13 }
 0x195   : > { %v545_v5 = vpop.trf.xlu0  ;;  %754 = vmatprep.mubr.bf16.mxu0 %v1595_v3 }
 0x197   : > { %v577_v16 = vpop.trf.xlu1 }
 0x199   : > { %v546_v6 = vpop.trf.xlu0 }
 0x19a   : > { %v586_v8 = vpack.c.bf16 %v546_v6, %v545_v5 }
 0x19b   : > { %v578_v19 = vpop.trf.xlu1 }
 0x19c   : > { %1394 = vmatmul.mubr.msk.bf16.gmra.mxu0 %vm597_vm6, %v586_v8  ;;  %v594_v33 = vpack.c.bf16 %v578_v19, %v577_v16 }
 0x19d   : > { %764 = vmatprep.mubr.bf16.mxu0 %v1595_v3 }
 0x1a4   : > { %1395 = vmatmul.mubr.msk.bf16.gmra.mxu0 %vm597_vm6, %v587_v10 }
 0x1a5   : > { %774 = vmatprep.mubr.bf16.mxu0 %v1595_v3 }
 0x1ac   : > { %1396 = vmatmul.mubr.msk.bf16.gmra.mxu0 %vm597_vm6, %v588_v12 }
 0x1ad   : > { %784 = vmatprep.mubr.bf16.mxu0 %v1595_v3 }
 0x1b4   : > { %1397 = vmatmul.mubr.msk.bf16.gmra.mxu0 %vm597_vm6, %v589_v15 }
 0x1b5   : > { %794 = vmatprep.mubr.bf16.mxu0 %v1595_v3 }
 0x1b8   : > { %v505_v25 = vpop.permute.xlu1 %504 }
 0x1bc   : > { %1398 = vmatmul.mubr.msk.bf16.gmra.mxu0 %vm597_vm6, %v590_v17 }
 0x1bd   : > { %804 = vmatprep.mubr.bf16.mxu0 %v1595_v3 }
 0x1c1   : > { %v402_v21 = vpop.permute.xlu0 %401 }
 0x1c2   : > { %v489_v23 = vadd.f32 %v488_v18, %v402_v21  ;;  %v491_v24 = vadd.f32 %v490_v20, %v402_v21 }
 0x1c4   : > { %vm495_vm7 = vcmp.ge.f32.partialorder %v489_v23, 0.0  ;;  %vm496_vm8 = vcmp.ge.f32.partialorder %v491_v24, 0.0  ;;  %v509_v26 = vmul.f32 %v505_v25, %v489_v23  ;;  %v510_v27 = vmul.f32 %v505_v25, %v491_v24  ;;  %1399 = vmatmul.mubr.msk.bf16.gmra.mxu0 %vm597_vm6, %v591_v22 }
 0x1c5   : > { %814 = vmatprep.mubr.bf16.mxu0 %v1595_v3 }
 0x1c6   : > { %v1716_v28 = vsel %vm495_vm7, %v489_v23, %v509_v26  ;;  %v514_v29 = vsel %vm496_vm8, %v491_v24, %v510_v27 }
 0x1c7   : > { %2289 = vst [vmem:[#allocation2_spill] sm:$0xff] %v1716_v28  ;;  %v1186_v30 = vpack.c.bf16 %v514_v29, %v514_v29 }
 0x1c9   : > { %1251 = vmatprep.mubr.bf16.mxu1 %v1186_v30 }
 0x1cc   : > { %1400 = vmatmul.mubr.msk.bf16.gmra.mxu0 %vm597_vm6, %v592_v31 }
 0x1cd   : > { %824 = vmatprep.mubr.bf16.mxu0 %v1595_v3 }
 0x1d4   : > { %1401 = vmatmul.mubr.msk.bf16.gmra.mxu0 %vm597_vm6, %v593_v32 }
 0x1d5   : > { %834 = vmatprep.mubr.bf16.mxu0 %v1595_v3 }
 0x1dc   : > { %1402 = vmatmul.mubr.msk.bf16.gmra.mxu0 %vm597_vm6, %v594_v33 }
 0x224   : > { %v1723_v34 = vpop.f32.mrf.mxu0 }
 0x226   : > { %v1725_v35 = vpop.f32.mrf.mxu0 }
 0x228   : > { %v1727_v36 = vpop.f32.mrf.mxu0 }
 0x22a   : > { %v1729_v37 = vpop.f32.mrf.mxu0 }
 0x22c   : > { %v1731_v38 = vpop.f32.mrf.mxu0 }
 0x22d   : > { %v845_v19 = vmax.f32 %v1723_v34, %v1731_v38 }
 0x22e   : > { %v1733_v39 = vpop.f32.mrf.mxu0 }
 0x230   : > { %v1735_v40 = vpop.f32.mrf.mxu0 }
 0x231   : > { %v846_v20 = vmax.f32 %v1727_v36, %v1735_v40 }
 0x232   : > { %v1737_v41 = vpop.f32.mrf.mxu0 }
 0x233   : > { %2290 = vst [vmem:[#allocation3_spill] sm:$0xff] %v1737_v41 }
 0x234   : > { %v1739_v3 = vpop.f32.mrf.mxu0 }
 0x235   : > { %v847_v22 = vmax.f32 %v845_v19, %v1739_v3 }
 0x236   : > { %v1741_v42 = vpop.f32.mrf.mxu0 }
 0x238   : > { %v1743_v43 = vpop.f32.mrf.mxu0 }
 0x239   : > { %v848_v23 = vmax.f32 %v846_v20, %v1743_v43 }
 0x23a   : > { %v1745_v44 = vpop.f32.mrf.mxu0 }
 0x23b   : > { %2291 = vst [vmem:[#allocation4_spill] sm:$0xff] %v1745_v44 }
 0x23c   : > { %v1747_v45 = vpop.f32.mrf.mxu0 }
 0x23d   : > { %v849_v25 = vmax.f32 %v847_v22, %v1747_v45 }
 0x23e   : > { %v1749_v46 = vpop.f32.mrf.mxu0 }
 0x240   : > { %v1751_v47 = vpop.f32.mrf.mxu0 }
 0x241   : > { %v850_v26 = vmax.f32 %v848_v23, %v1751_v47 }
 0x242   : > { %v1753_v48 = vpop.f32.mrf.mxu0 }
 0x243   : > { %2292 = vst [vmem:[#allocation5_spill] sm:$0xff] %v1753_v48 }
 0x244   : > { %v1755_v49 = vpop.f32.mrf.mxu0 }
 0x245   : > { %2293 = vst [vmem:[#allocation6_spill] sm:$0xff] %v1755_v49  ;;  %v851_v29 = vmax.f32 %v849_v25, %v1755_v49 }
 0x246   : > { %v1757_v50 = vpop.f32.mrf.mxu0 }
 0x247   : > { %2294 = vst [vmem:[#allocation7_spill] sm:$0xff] %v1757_v50 }
 0x248   : > { %v1759_v51 = vpop.f32.mrf.mxu0 }
 0x249   : > { %v852_v30 = vmax.f32 %v850_v26, %v1759_v51 }
 0x24a   : > { %v1761_v52 = vpop.f32.mrf.mxu0 }
 0x24b   : > { %2295 = vst [vmem:[#allocation8_spill] sm:$0xff] %v1761_v52 }
 0x24c   : > { %v1763_v53 = vpop.f32.mrf.mxu0 }
 0x24d   : > { %2296 = vst [vmem:[#allocation9_spill] sm:$0xff] %v1763_v53  ;;  %v853_v32 = vmax.f32 %v851_v29, %v1763_v53 }
 0x24e   : > { %v1765_v54 = vpop.f32.mrf.mxu0 }
 0x250   : > { %v1767_v55 = vpop.f32.mrf.mxu0 }
 0x251   : > { %v854_v33 = vmax.f32 %v852_v30, %v1767_v55 }
 0x252   : > { %v1769_v56 = vpop.f32.mrf.mxu0 }
 0x254   : > { %v1771_v57 = vpop.f32.mrf.mxu0 }
 0x255   : > { %2297 = vst [vmem:[#allocation10_spill] sm:$0xff] %v1771_v57  ;;  %v855_v20 = vmax.f32 %v853_v32, %v1771_v57 }
 0x256   : > { %v1773_v58 = vpop.f32.mrf.mxu0 }
 0x258   : > { %v1775_v59 = vpop.f32.mrf.mxu0 }
 0x259   : > { %v856_v22 = vmax.f32 %v854_v33, %v1775_v59  ;;  %v883_v33 = vmax.f32 %v1729_v37, %v1737_v41 }
 0x25a   : > { %v1777_v60 = vpop.f32.mrf.mxu0 }
 0x25c   : > { %v1779_v61 = vpop.f32.mrf.mxu0 }
 0x25d   : > { %v857_v23 = vmax.f32 %v855_v20, %v1779_v61 }
 0x25e   : > { %v1781_v62 = vpop.f32.mrf.mxu0 }
 0x260   : > { %v1783_v63 = vpop.f32.mrf.mxu0 }
 0x261   : > { %2298 = vst [vmem:[#allocation11_spill] sm:$0xff] %v1783_v63  ;;  %v858_v25 = vmax.f32 %v856_v22, %v1783_v63 }
 0x262   : > { %v1785_v0 = vpop.f32.mrf.mxu0 }
 0x264   : > { %v1787_v1 = vpop.f32.mrf.mxu0 }
 0x265   : > { %v859_v26 = vmax.f32 %v857_v23, %v1787_v1  ;;  %v882_v23 = vmax.f32 %v1725_v35, %v1733_v39 }
 0x266   : > { %v1789_v2 = vpop.f32.mrf.mxu0 }
 0x268   : > { %v1791_v4 = vpop.f32.mrf.mxu0 }
 0x269   : > { %v860_v29 = vmax.f32 %v858_v25, %v1791_v4  ;;  %v885_v25 = vmax.f32 %v883_v33, %v1745_v44 }
 0x26a   : > { %v1793_v5 = vpop.f32.mrf.mxu0 }
 0x26b   : > { %v887_v41 = vmax.f32 %v885_v25, %v1753_v48 }
 0x26c   : > { %v1795_v6 = vpop.f32.mrf.mxu0 }
 0x26d   : > { %2299 = vst [vmem:[#allocation12_spill] sm:$0xff] %v1795_v6  ;;  %v861_v30 = vmax.f32 %v859_v26, %v1795_v6  ;;  %v884_v6 = vmax.f32 %v882_v23, %v1741_v42  ;;  %v889_v33 = vmax.f32 %v887_v41, %v1761_v52 }
 0x26e   : > { %v1797_v7 = vpop.f32.mrf.mxu0 }
 0x26f   : > { %v891_v25 = vmax.f32 %v889_v33, %v1769_v56 }
 0x270   : > { %v1799_v8 = vpop.f32.mrf.mxu0 }
 0x271   : > { %2300 = vst [vmem:[#allocation13_spill] sm:$0xff] %v1799_v8  ;;  %v862_v32 = vmax.f32 %v860_v29, %v1799_v8  ;;  %v893_v41 = vmax.f32 %v891_v25, %v1777_v60 }
 0x272   : > { %v1801_v9 = vpop.f32.mrf.mxu0 }
 0x274   : > { %v1803_v10 = vpop.f32.mrf.mxu0 }
 0x275   : > { %2301 = vst [vmem:[#allocation14_spill] sm:$0xff] %v1803_v10  ;;  %v863_v20 = vmax.f32 %v861_v30, %v1803_v10  ;;  %v886_v10 = vmax.f32 %v884_v6, %v1749_v46 }
 0x276   : > { %v1805_v11 = vpop.f32.mrf.mxu0 }
 0x277   : > { %v888_v23 = vmax.f32 %v886_v10, %v1757_v50  ;;  %v895_v10 = vmax.f32 %v893_v41, %v1785_v0 }
 0x278   : > { %v1807_v12 = vpop.f32.mrf.mxu0 }
 0x279   : > { %2302 = vst [vmem:[#allocation15_spill] sm:$0xff] %v1807_v12  ;;  %v864_v22 = vmax.f32 %v862_v32, %v1807_v12  ;;  %v890_v6 = vmax.f32 %v888_v23, %v1765_v54 }
 0x27a   : > { %v1809_v13 = vpop.f32.mrf.mxu0 }
 0x27b   : > { %v892_v52 = vmax.f32 %v890_v6, %v1773_v58 }
 0x27c   : > { %v1811_v14 = vpop.f32.mrf.mxu0 }
 0x27d   : > { %v865_v26 = vmax.f32 %v863_v20, %v1811_v14  ;;  %v894_v33 = vmax.f32 %v892_v52, %v1781_v62 }
 0x27e   : > { %v1813_v15 = vpop.f32.mrf.mxu0 }
 0x280   : > { %v1815_v16 = vpop.f32.mrf.mxu0 }
 0x281   : > { %v866_v29 = vmax.f32 %v864_v22, %v1815_v16 }
 0x282   : > { %v1817_v17 = vpop.f32.mrf.mxu0 }
 0x284   : > { %v1819_v18 = vpop.f32.mrf.mxu0 }
 0x285   : > { %v867_v30 = vmax.f32 %v865_v26, %v1819_v18 }
 0x286   : > { %v1825_v21 = vpop.f32.mrf.mxu0 }
 0x288   : > { %v1829_v24 = vpop.f32.mrf.mxu0 }
 0x289   : > { %v868_v32 = vmax.f32 %v866_v29, %v1829_v24 }
 0x28a   : > { %v1833_v27 = vpop.f32.mrf.mxu0 }
 0x28c   : > { %v1837_v31 = vpop.f32.mrf.mxu0 }
 0x28d   : > { %v869_v20 = vmax.f32 %v867_v30, %v1837_v31 }
 0x28e   : > { %v1841_v19 = vpop.f32.mrf.mxu0 }
 0x290   : > { %v1845_v28 = vpop.f32.mrf.mxu0 }
 0x291   : > { %v870_v22 = vmax.f32 %v868_v32, %v1845_v28 }
 0x292   : > { %v1849_v49 = vpop.f32.mrf.mxu0 }
 0x294   : > { %v1853_v53 = vpop.f32.mrf.mxu0 }
 0x295   : > { %2303 = vst [vmem:[#allocation16_spill] sm:$0xff] %v1853_v53  ;;  %v871_v26 = vmax.f32 %v869_v20, %v1853_v53  ;;  %v897_v20 = vmax.f32 %v895_v10, %v1793_v5 }
 0x296   : > { %v1857_v57 = vpop.f32.mrf.mxu0 }
 0x297   : > { %v899_v23 = vmax.f32 %v897_v20, %v1801_v9 }
 0x298   : > { %v1863_v63 = vpop.f32.mrf.mxu0 }
 0x299   : > { %2304 = vst [vmem:[#allocation17_spill] sm:$0xff] %v1863_v63  ;;  %v872_v29 = vmax.f32 %v870_v22, %v1863_v63  ;;  %v896_v63 = vmax.f32 %v894_v33, %v1789_v2 }
 0x29a   : > { %v1870_v8 = vpop.f32.mrf.mxu0 }
 0x29b   : > { %v898_v25 = vmax.f32 %v896_v63, %v1797_v7 }
 0x29c   : > { %v1876_v12 = vpop.f32.mrf.mxu0 }
 0x29d   : > { %v873_v30 = vmax.f32 %v871_v26, %v1876_v12  ;;  %v901_v26 = vmax.f32 %v899_v23, %v1809_v13  ;;  %v900_v6 = vmax.f32 %v898_v25, %v1805_v11 }
 0x29e   : > { %v1882_v44 = vpop.f32.mrf.mxu0 }
 0x29f   : > { %v903_v41 = vmax.f32 %v901_v26, %v1817_v17  ;;  %v902_v52 = vmax.f32 %v900_v6, %v1813_v15 }
 0x2a0   : > { %v1888_v48 = vpop.f32.mrf.mxu0 }
 0x2a1   : > { %v874_v32 = vmax.f32 %v872_v29, %v1888_v48  ;;  %v904_v33 = vmax.f32 %v902_v52, %v1825_v21 }
 0x2a3   : > { %v875_v50 = vmax.f32 %v873_v30, %v874_v32  ;;  %v905_v32 = vmax.f32 %v903_v41, %v1833_v27  ;;  %v906_v63 = vmax.f32 %v904_v33, %v1841_v19 }
 0x2a5   : > { %v876_v22 = vrot.slane %v875_v50, 4  ;;  %v907_v20 = vmax.f32 %v905_v32, %v1849_v49  ;;  %v908_v25 = vmax.f32 %v906_v63, %v1857_v57 }
 0x2a7   : > { %v877_v53 = vmax.f32 %v875_v50, %v876_v22  ;;  %v1908_v50 = vpop.f32.mrf.mxu0  ;;  %v909_v22 = vmax.f32 %v907_v20, %v1870_v8  ;;  %v910_v26 = vmax.f32 %v908_v25, %v1882_v44 }
 0x2a9   : > { %v878_v29 = vrot.slane %v877_v53, 2 }
 0x2ab   : > { %v879_v30 = vmax.f32 %v877_v53, %v878_v29  ;;  %v911_v53 = vmax.f32 %v909_v22, %v1908_v50 }
 0x2ad   : > { %v880_v10 = vrot.slane %v879_v30, 1  ;;  %v912_v52 = vmax.f32 %v910_v26, %v911_v53 }
 0x2af   : > { %v1912_v23 = vmax.f32 %v879_v30, %v880_v10  ;;  %v913_v63 = vrot.slane %v912_v52, 4 }
 0x2b1   : > { %v919_v29 = vsub.f32 %v1723_v34, %v1912_v23  ;;  %v921_v6 = vsub.f32 %v1727_v36, %v1912_v23  ;;  %v923_v41 = vsub.f32 %v1731_v38, %v1912_v23  ;;  %v925_v30 = vsub.f32 %v1735_v40, %v1912_v23 }
 0x2b2   : > { %v927_v33 = vsub.f32 %v1739_v3, %v1912_v23  ;;  %v929_v34 = vsub.f32 %v1743_v43, %v1912_v23  ;;  %v931_v38 = vsub.f32 %v1747_v45, %v1912_v23  ;;  %v914_v25 = vmax.f32 %v912_v52, %v913_v63  ;;  %v2305_v3 = vld [vmem:[#allocation6_spill] sm:$0xff] }
 0x2b3   : > { %v983_v32 = vmul.f32 1.442695, %v919_v29  ;;  %v987_v10 = vmul.f32 1.442695, %v921_v6  ;;  %v991_v20 = vmul.f32 1.442695, %v923_v41  ;;  %v933_v40 = vsub.f32 %v1751_v47, %v1912_v23 }
 0x2b4   : > { %v995_v36 = vmul.f32 1.442695, %v925_v30  ;;  %v999_v22 = vmul.f32 1.442695, %v927_v33  ;;  %v1003_v53 = vmul.f32 1.442695, %v929_v34  ;;  %v935_v26 = vsub.f32 %v2305_v3, %v1912_v23 }
 0x2b5   : > { %1438 = vpow2.f32 %v983_v32  ;;  %v1007_v29 = vmul.f32 1.442695, %v931_v38  ;;  %v937_v43 = vsub.f32 %v1759_v51, %v1912_v23  ;;  %v915_v6 = vrot.slane %v914_v25, 2  ;;  %v2306_v41 = vld [vmem:[#allocation9_spill] sm:$0xff]  ;;  %v2307_v47 = vld [vmem:[#allocation10_spill] sm:$0xff] }
 0x2b6   : > { %1440 = vpow2.f32 %v987_v10  ;;  %v939_v45 = vsub.f32 %v2306_v41, %v1912_v23  ;;  %v1011_v30 = vmul.f32 1.442695, %v933_v40  ;;  %v941_v52 = vsub.f32 %v1767_v55, %v1912_v23 }
 0x2b7   : > { %1442 = vpow2.f32 %v991_v20  ;;  %v943_v32 = vsub.f32 %v2307_v47, %v1912_v23  ;;  %v1015_v10 = vmul.f32 1.442695, %v935_v26  ;;  %v945_v33 = vsub.f32 %v1775_v59, %v1912_v23 }
 0x2b8   : > { %1444 = vpow2.f32 %v995_v36  ;;  %v1019_v20 = vmul.f32 1.442695, %v937_v43  ;;  %v916_v63 = vmax.f32 %v914_v25, %v915_v6  ;;  %v947_v34 = vsub.f32 %v1779_v61, %v1912_v23 }
 0x2b9   : > { %1446 = vpow2.f32 %v999_v22  ;;  %v1023_v36 = vmul.f32 1.442695, %v939_v45  ;;  %v963_v55 = vsub.f32 %v1811_v14, %v1912_v23  ;;  %v1027_v22 = vmul.f32 1.442695, %v941_v52 }
 0x2ba   : > { %1448 = vpow2.f32 %v1003_v53  ;;  %v965_v40 = vsub.f32 %v1815_v16, %v1912_v23  ;;  %v1031_v59 = vmul.f32 1.442695, %v943_v32  ;;  %v967_v61 = vsub.f32 %v1819_v18, %v1912_v23 }
 0x2bb   : > { %1450 = vpow2.f32 %v1007_v29  ;;  %v1035_v3 = vmul.f32 1.442695, %v945_v33  ;;  %v917_v26 = vrot.slane %v916_v63, 1  ;;  %v969_v14 = vsub.f32 %v1829_v24, %v1912_v23  ;;  %v2309_v24 = vld [vmem:[#allocation11_spill] sm:$0xff] }
 0x2bc   : > { %1452 = vpow2.f32 %v1011_v30  ;;  %v1039_v29 = vmul.f32 1.442695, %v947_v34  ;;  %v971_v6 = vsub.f32 %v1837_v31, %v1912_v23  ;;  %v1071_v41 = vmul.f32 1.442695, %v963_v55  ;;  %v2310_v55 = vld [vmem:[#allocation12_spill] sm:$0xff] }
 0x2bd   : > { %1454 = vpow2.f32 %v1015_v10  ;;  %v973_v18 = vsub.f32 %v1845_v28, %v1912_v23  ;;  %v1075_v45 = vmul.f32 1.442695, %v965_v40  ;;  %v949_v47 = vsub.f32 %v2309_v24, %v1912_v23 }
 0x2be   : > { %1456 = vpow2.f32 %v1019_v20  ;;  %v1079_v32 = vmul.f32 1.442695, %v967_v61  ;;  %v1975_v10 = vmax.f32 %v916_v63, %v917_v26  ;;  %v951_v31 = vsub.f32 %v1787_v1, %v1912_v23 }
 0x2bf   : > { %1458 = vpow2.f32 %v1023_v36  ;;  %v1083_v33 = vmul.f32 1.442695, %v969_v14  ;;  %v953_v34 = vsub.f32 %v1791_v4, %v1912_v23  ;;  %v1087_v36 = vmul.f32 1.442695, %v971_v6  ;;  %v2311_v14 = vld [vmem:[#allocation13_spill] sm:$0xff] }
 0x2c0   : > { %1460 = vpow2.f32 %v1027_v22  ;;  %v955_v22 = vsub.f32 %v2310_v55, %v1912_v23  ;;  %v1091_v63 = vmul.f32 1.442695, %v973_v18  ;;  %v1043_v1 = vmul.f32 1.442695, %v949_v47 }
 0x2c1   : > { %1462 = vpow2.f32 %v1031_v59  ;;  %v1047_v61 = vmul.f32 1.442695, %v951_v31 }
 0x2c2   : > { %v1945_v51 = vpop.eup %1438  ;;  %1464 = vpow2.f32 %v1035_v3  ;;  %v922_v3 = vsub.f32 %v1729_v37, %v1975_v10  ;;  %v1055_v6 = vmul.f32 1.442695, %v955_v22 }
 0x2c3   : > { %v1949_v38 = vpop.eup %1440  ;;  %1466 = vpow2.f32 %v1039_v29  ;;  %v957_v29 = vsub.f32 %v2311_v14, %v1912_v23 }
 0x2c4   : > { %2308 = vst [vmem:[#allocation6_spill] sm:$0xff] %v1949_v38  ;;  %v1111_v25 = vadd.f32 %v1949_v38, %v1945_v51  ;;  %v1957_v53 = vpop.eup %1442  ;;  %1468 = vpow2.f32 %v1071_v41 }
 0x2c5   : > { %v1964_v43 = vpop.eup %1444  ;;  %1470 = vpow2.f32 %v1075_v45  ;;  %v2312_v45 = vld [vmem:[#allocation14_spill] sm:$0xff] }
 0x2c6   : > { %v1112_v16 = vadd.f32 %v1957_v53, %v1111_v25  ;;  %v1971_v52 = vpop.eup %1446  ;;  %1472 = vpow2.f32 %v1079_v32  ;;  %v920_v25 = vsub.f32 %v1725_v35, %v1975_v10  ;;  %v924_v35 = vsub.f32 %v1733_v39, %v1975_v10  ;;  %v2313_v32 = vld [vmem:[#allocation3_spill] sm:$0xff] }
 0x2c7   : > { %v1980_v20 = vpop.eup %1448  ;;  %1474 = vpow2.f32 %v1083_v33  ;;  %v926_v31 = vsub.f32 %v2313_v32, %v1975_v10  ;;  %v989_v33 = vmul.f32 1.442695, %v922_v3  ;;  %v2314_v39 = vld [vmem:[#allocation15_spill] sm:$0xff] }
 0x2c8   : > { %v1113_v30 = vadd.f32 %v1964_v43, %v1112_v16  ;;  %v1987_v59 = vpop.eup %1450  ;;  %v1051_v16 = vmul.f32 1.442695, %v953_v34  ;;  %1476 = vpow2.f32 %v1087_v36  ;;  %v985_v37 = vmul.f32 1.442695, %v920_v25 }
 0x2c9   : > { %v1994_v26 = vpop.eup %1452  ;;  %1478 = vpow2.f32 %v1091_v63  ;;  %v961_v34 = vsub.f32 %v2314_v39, %v1912_v23  ;;  %v1059_v36 = vmul.f32 1.442695, %v957_v29  ;;  %v928_v63 = vsub.f32 %v1741_v42, %v1975_v10 }
 0x2ca   : > { %v1114_v28 = vadd.f32 %v1971_v52, %v1113_v30  ;;  %v2001_v18 = vpop.eup %1454  ;;  %v959_v30 = vsub.f32 %v2312_v45, %v1912_v23  ;;  %1480 = vpow2.f32 %v1043_v1  ;;  %v932_v29 = vsub.f32 %v1749_v46, %v1975_v10 }
 0x2cb   : > { %v2005_v24 = vpop.eup %1456  ;;  %1482 = vpow2.f32 %v1047_v61  ;;  %v2315_v61 = vld [vmem:[#allocation4_spill] sm:$0xff]  ;;  %v1067_v42 = vmul.f32 1.442695, %v961_v34  ;;  %v1001_v32 = vmul.f32 1.442695, %v928_v63  ;;  %v944_v46 = vsub.f32 %v1773_v58, %v1975_v10 }
 0x2cc   : > { %v1115_v40 = vadd.f32 %v1980_v20, %v1114_v28  ;;  %v2010_v28 = vpop.eup %1458  ;;  %1484 = vpow2.f32 %v1051_v16  ;;  %v1063_v25 = vmul.f32 1.442695, %v959_v30  ;;  %v997_v16 = vmul.f32 1.442695, %v926_v31 }
 0x2cd   : > { %v2014_v55 = vpop.eup %1460  ;;  %1486 = vpow2.f32 %v1055_v6  ;;  %v946_v31 = vsub.f32 %v1777_v60, %v1975_v10  ;;  %v950_v58 = vsub.f32 %v1785_v0, %v1975_v10 }
 0x2ce   : > { %v1116_v4 = vadd.f32 %v1987_v59, %v1115_v40  ;;  %v993_v40 = vmul.f32 1.442695, %v924_v35  ;;  %v2019_v1 = vpop.eup %1462  ;;  %1488 = vpow2.f32 %v985_v37  ;;  %v2317_v37 = vld [vmem:[#allocation7_spill] sm:$0xff] }
 0x2cf   : > { %v2023_v3 = vpop.eup %1464  ;;  %1490 = vpow2.f32 %v989_v33 }
 0x2d0   : > { %v1117_v41 = vadd.f32 %v1994_v26, %v1116_v4  ;;  %v930_v4 = vsub.f32 %v2315_v61, %v1975_v10  ;;  %v2028_v6 = vpop.eup %1466  ;;  %1492 = vpow2.f32 %v1059_v36 }
 0x2d1   : > { %v2032_v45 = vpop.eup %1468  ;;  %1494 = vpow2.f32 %v993_v40 }
 0x2d2   : > { %v1118_v47 = vadd.f32 %v2001_v18, %v1117_v41  ;;  %v2316_v41 = vld [vmem:[#allocation5_spill] sm:$0xff]  ;;  %v2037_v39 = vpop.eup %1470  ;;  %1496 = vpow2.f32 %v1063_v25  ;;  %v1005_v33 = vmul.f32 1.442695, %v930_v4  ;;  %v948_v25 = vsub.f32 %v1781_v62, %v1975_v10 }
 0x2d3   : > { %v934_v35 = vsub.f32 %v2316_v41, %v1975_v10  ;;  %v2043_v34 = vpop.eup %1472  ;;  %1498 = vpow2.f32 %v997_v16  ;;  %v1033_v62 = vmul.f32 1.442695, %v944_v46 }
 0x2d4   : > { %v1119_v22 = vadd.f32 %v2005_v24, %v1118_v47  ;;  %v936_v47 = vsub.f32 %v2317_v37, %v1975_v10  ;;  %v2048_v63 = vpop.eup %1474  ;;  %1500 = vpow2.f32 %v1067_v42  ;;  %v2318_v42 = vld [vmem:[#allocation8_spill] sm:$0xff] }
 0x2d5   : > { %v1013_v60 = vmul.f32 1.442695, %v934_v35  ;;  %v2054_v61 = vpop.eup %1476  ;;  %1502 = vpow2.f32 %v1001_v32  ;;  %v938_v41 = vsub.f32 %v2318_v42, %v1975_v10  ;;  %v1037_v35 = vmul.f32 1.442695, %v946_v31 }
 0x2d6   : > { %v1120_v14 = vadd.f32 %v2010_v28, %v1119_v22  ;;  %v1009_v22 = vmul.f32 1.442695, %v932_v29  ;;  %v2059_v16 = vpop.eup %1478  ;;  %1504 = vpow2.f32 %v1005_v33  ;;  %v940_v32 = vsub.f32 %v1765_v54, %v1975_v10 }
 0x2d7   : > { %v942_v33 = vsub.f32 %v1769_v56, %v1975_v10  ;;  %v1021_v29 = vmul.f32 1.442695, %v938_v41  ;;  %v2324_v41 = vld [vmem:[#allocation17_spill] sm:$0xff] }
 0x2d8   : > { %v1121_v30 = vadd.f32 %v2014_v55, %v1120_v14  ;;  %v1017_v14 = vmul.f32 1.442695, %v936_v47  ;;  %1506 = vpow2.f32 %v1009_v22  ;;  %v1045_v22 = vmul.f32 1.442695, %v950_v58 }
 0x2d9   : > { %1508 = vpow2.f32 %v1013_v60  ;;  %v1029_v58 = vmul.f32 1.442695, %v942_v33 }
 0x2da   : > { %v1122_v36 = vadd.f32 %v2019_v1, %v1121_v30  ;;  %v2063_v30 = vpop.eup %1480  ;;  %1510 = vpow2.f32 %v1017_v14 }
 0x2db   : > { %v2068_v47 = vpop.eup %1482  ;;  %1512 = vpow2.f32 %v1033_v62 }
 0x2dc   : > { %v1123_v4 = vadd.f32 %v2023_v3, %v1122_v36  ;;  %2319 = vst [vmem:[#allocation9_spill] sm:$0xff] %v2068_v47  ;;  %v1041_v36 = vmul.f32 1.442695, %v948_v25  ;;  %v2072_v40 = vpop.eup %1484  ;;  %1514 = vpow2.f32 %v1037_v35  ;;  %v2322_v25 = vld [vmem:[#allocation16_spill] sm:$0xff]  ;;  %v977_v35 = vsub.f32 %v2324_v41, %v1912_v23 }
 0x2dd   : > { %2320 = vst [vmem:[#allocation10_spill] sm:$0xff] %v2072_v40  ;;  %v2077_v31 = vpop.eup %1486  ;;  %v975_v60 = vsub.f32 %v2322_v25, %v1912_v23  ;;  %v972_v25 = vsub.f32 %v1841_v19, %v1975_v10 }
 0x2de   : > { %v1124_v0 = vadd.f32 %v2028_v6, %v1123_v4  ;;  %2321 = vst [vmem:[#allocation11_spill] sm:$0xff] %v2077_v31  ;;  %v2079_v4 = vpop.eup %1488  ;;  %1516 = vpow2.f32 %v1041_v36 }
 0x2df   : > { %v2082_v54 = vpop.eup %1490  ;;  %1518 = vpow2.f32 %v1045_v22  ;;  %v1095_v22 = vmul.f32 1.442695, %v975_v60  ;;  %v981_v60 = vsub.f32 %v1888_v48, %v1912_v23 }
 0x2e0   : > { %v1125_v46 = vadd.f32 %v2063_v30, %v1124_v0  ;;  %v1025_v0 = vmul.f32 1.442695, %v940_v32  ;;  %v2086_v37 = vpop.eup %1492  ;;  %v1148_v14 = vadd.f32 %v2082_v54, %v2079_v4  ;;  %v979_v32 = vsub.f32 %v1876_v12, %v1912_v23 }
 0x2e1   : > { %2323 = vst [vmem:[#allocation12_spill] sm:$0xff] %v2086_v37  ;;  %v2091_v62 = vpop.eup %1494  ;;  %1520 = vpow2.f32 %v1021_v29  ;;  %v954_v23 = vsub.f32 %v1793_v5, %v1975_v10 }
 0x2e2   : > { %v1126_v42 = vadd.f32 %v2068_v47, %v1125_v46  ;;  %v2095_v46 = vpop.eup %1496  ;;  %1522 = vpow2.f32 %v1025_v0  ;;  %v974_v47 = vsub.f32 %v1849_v49, %v1975_v10  ;;  %v1103_v19 = vmul.f32 1.442695, %v979_v32 }
 0x2e3   : > { %v2101_v33 = vpop.eup %1498  ;;  %1524 = vpow2.f32 %v1029_v58  ;;  %v952_v49 = vsub.f32 %v1789_v2, %v1975_v10  ;;  %v1089_v58 = vmul.f32 1.442695, %v972_v25 }
 0x2e4   : > { %v1127_v56 = vadd.f32 %v2072_v40, %v1126_v42  ;;  %v1149_v42 = vadd.f32 %v2091_v62, %v1148_v14  ;;  %v2105_v40 = vpop.eup %1500  ;;  %1526 = vpow2.f32 %v1095_v22  ;;  %v956_v22 = vsub.f32 %v1797_v7, %v1975_v10 }
 0x2e5   : > { %2325 = vst [vmem:[#allocation13_spill] sm:$0xff] %v2105_v40  ;;  %v2111_v29 = vpop.eup %1502 }
 0x2e6   : > { %v1128_v36 = vadd.f32 %v2077_v31, %v1127_v56  ;;  %v1150_v12 = vadd.f32 %v2101_v33, %v1149_v42  ;;  %v1099_v56 = vmul.f32 1.442695, %v977_v35  ;;  %v2113_v14 = vpop.eup %1504 }
 0x2e8   : > { %v1129_v41 = vadd.f32 %v2086_v37, %v1128_v36  ;;  %v1151_v31 = vadd.f32 %v2111_v29, %v1150_v12  ;;  %v2119_v36 = vpop.eup %1506  ;;  %v1093_v37 = vmul.f32 1.442695, %v974_v47  ;;  %1528 = vpow2.f32 %v1099_v56 }
 0x2e9   : > { %v2123_v42 = vpop.eup %1508  ;;  %1530 = vpow2.f32 %v1103_v19  ;;  %v1049_v56 = vmul.f32 1.442695, %v952_v49  ;;  %v1053_v19 = vmul.f32 1.442695, %v954_v23  ;;  %v1057_v49 = vmul.f32 1.442695, %v956_v22 }
 0x2ea   : > { %v1130_v0 = vadd.f32 %v2095_v46, %v1129_v41  ;;  %v1152_v38 = vadd.f32 %v2113_v14, %v1151_v31  ;;  %v2127_v48 = vpop.eup %1510  ;;  %v1107_v41 = vmul.f32 1.442695, %v981_v60  ;;  %1532 = vpow2.f32 %v1089_v58 }
 0x2eb   : > { %v1513_v32 = vpop.eup %1512  ;;  %1534 = vpow2.f32 %v1093_v37  ;;  %v958_v60 = vsub.f32 %v1801_v9, %v1975_v10  ;;  %v960_v37 = vsub.f32 %v1805_v11, %v1975_v10 }
 0x2ec   : > { %v1131_v35 = vadd.f32 %v2105_v40, %v1130_v0  ;;  %v1153_v25 = vadd.f32 %v2119_v36, %v1152_v38  ;;  %v1515_v12 = vpop.eup %1514  ;;  %1536 = vpow2.f32 %v1107_v41  ;;  %v964_v40 = vsub.f32 %v1813_v15, %v1975_v10 }
 0x2ed   : > { %v2135_v47 = vpop.eup %1516  ;;  %1538 = vpow2.f32 %v1049_v56  ;;  %v1200_v41 = vpack.c.bf16 %v1515_v12, %v1513_v32  ;;  %v1061_v22 = vmul.f32 1.442695, %v958_v60  ;;  %v982_v56 = vsub.f32 %v1908_v50, %v1975_v10 }
 0x2ee   : > { %v1132_v2 = vadd.f32 %v2032_v45, %v1131_v35  ;;  %v1154_v5 = vadd.f32 %v2123_v42, %v1153_v25  ;;  %v2139_v0 = vpop.eup %1518  ;;  %1540 = vpow2.f32 %v1053_v19  ;;  %v966_v60 = vsub.f32 %v1817_v17, %v1975_v10 }
 0x2ef   : > { %v1202_v58 = vpack.c.bf16 %v2139_v0, %v2135_v47  ;;  %v1521_v35 = vpop.eup %1520  ;;  %1542 = vpow2.f32 %v1057_v49  ;;  %v976_v50 = vsub.f32 %v1857_v57, %v1975_v10  ;;  %v978_v17 = vsub.f32 %v1870_v8, %v1975_v10 }
 0x2f0   : > { %v1133_v31 = vadd.f32 %v2037_v39, %v1132_v2  ;;  %v1155_v7 = vadd.f32 %v2127_v48, %v1154_v5  ;;  %v1201_v2 = vpack.c.bf16 %v2063_v30, %v2028_v6  ;;  %v1523_v25 = vpop.eup %1522  ;;  %v962_v5 = vsub.f32 %v1809_v13, %v1975_v10 }
 0x2f1   : > { %1219 = vmatprep.subr.bf16.mxu1 %v1202_v58  ;;  %v980_v30 = vsub.f32 %v1882_v44, %v1975_v10  ;;  %v1199_v13 = vpack.c.bf16 %v2023_v3, %v2019_v1  ;;  %v968_v44 = vsub.f32 %v1825_v21, %v1975_v10  ;;  %1544 = vpow2.f32 %v1061_v22 }
 0x2f2   : > { %v1134_v38 = vadd.f32 %v2043_v34, %v1133_v31  ;;  %v1156_v23 = vadd.f32 %v1521_v35, %v1155_v7  ;;  %v1525_v31 = vpop.eup %1524  ;;  %1220 = vmatpush1.bf16.msra.mxu1 %v1201_v2  ;;  %v1069_v19 = vmul.f32 1.442695, %v962_v5  ;;  %v1073_v3 = vmul.f32 1.442695, %v964_v40 }
 0x2f3   : > { %1221 = vmatprep.subr.bf16.mxu1 %v1200_v41  ;;  %v1198_v58 = vpack.c.bf16 %v1525_v31, %v1523_v25  ;;  %v2164_v2 = vpop.eup %1526  ;;  %v1109_v21 = vmul.f32 1.442695, %v982_v56  ;;  %v1197_v57 = vpack.c.bf16 %v2014_v55, %v2010_v28  ;;  %v1196_v40 = vpack.c.bf16 %v1521_v35, %v2127_v48 }
 0x2f4   : > { %v1135_v9 = vadd.f32 %v2048_v63, %v1134_v38  ;;  %v1157_v6 = vadd.f32 %v1523_v25, %v1156_v23  ;;  %v1065_v38 = vmul.f32 1.442695, %v960_v37  ;;  %v970_v5 = vsub.f32 %v1833_v27, %v1975_v10 }
 0x2f5   : > { %v2172_v37 = vpop.eup %1528  ;;  %v1077_v8 = vmul.f32 1.442695, %v966_v60  ;;  %v1097_v48 = vmul.f32 1.442695, %v976_v50  ;;  %v1101_v35 = vmul.f32 1.442695, %v978_v17  ;;  %v1195_v27 = vpack.c.bf16 %v2005_v24, %v2001_v18 }
 0x2f6   : > { %v1136_v11 = vadd.f32 %v2054_v61, %v1135_v9  ;;  %v1158_v15 = vadd.f32 %v1525_v31, %v1157_v6  ;;  %1222 = vmatpush1.bf16.msra.mxu1 %v1199_v13  ;;  %v2175_v25 = vpop.eup %1530  ;;  %v1105_v9 = vmul.f32 1.442695, %v980_v30  ;;  %1546 = vpow2.f32 %v1065_v38 }
 0x2f7   : > { %1223 = vmatprep.subr.bf16.mxu1 %v1198_v58  ;;  %v2181_v23 = vpop.eup %1532  ;;  %1548 = vpow2.f32 %v1069_v19  ;;  %v1194_v30 = vpack.c.bf16 %v2123_v42, %v2119_v36  ;;  %v1085_v56 = vmul.f32 1.442695, %v970_v5  ;;  %v1193_v18 = vpack.c.bf16 %v1994_v26, %v1987_v59 }
 0x2f8   : > { %v1137_v7 = vadd.f32 %v2059_v16, %v1136_v11  ;;  %v1159_v49 = vadd.f32 %v1513_v32, %v1158_v15  ;;  %v2185_v32 = vpop.eup %1534  ;;  %v1081_v11 = vmul.f32 1.442695, %v968_v44  ;;  %1550 = vpow2.f32 %v1073_v3 }
 0x2f9   : > { %v1214_v55 = vpack.c.bf16 %v2185_v32, %v2181_v23  ;;  %1552 = vpow2.f32 %v1105_v9  ;;  %v1192_v36 = vpack.c.bf16 %v2113_v14, %v2111_v29  ;;  %v1191_v15 = vpack.c.bf16 %v1980_v20, %v1971_v52 }
 0x2fa   : > { %v1138_v1 = vadd.f32 %v2164_v2, %v1137_v7  ;;  %v1160_v31 = vadd.f32 %v1515_v12, %v1159_v49  ;;  %1224 = vmatpush1.bf16.msra.mxu1 %v1197_v57  ;;  %v1537_v12 = vpop.eup %1536  ;;  %1554 = vpow2.f32 %v1109_v21  ;;  %v1190_v60 = vpack.c.bf16 %v2101_v33, %v2091_v62  ;;  %v2326_v33 = vld [vmem:[#allocation6_spill] sm:$0xff] }
 0x2fb   : > { %1225 = vmatprep.subr.bf16.mxu1 %v1196_v40  ;;  %1556 = vpow2.f32 %v1077_v8  ;;  %v1189_v29 = vpack.c.bf16 %v1964_v43, %v1957_v53  ;;  %v1187_v49 = vpack.c.bf16 %v2326_v33, %v1945_v51  ;;  %v1215_v40 = vpack.c.bf16 %v2172_v37, %v2164_v2 }
 0x2fc   : > { %v1139_v41 = vadd.f32 %v2172_v37, %v1138_v1  ;;  %v1161_v28 = vadd.f32 %v2135_v47, %v1160_v31  ;;  %v2200_v47 = vpop.eup %1538  ;;  %1558 = vpow2.f32 %v1081_v11  ;;  %v1188_v1 = vpack.c.bf16 %v2082_v54, %v2079_v4 }
 0x2fd   : > { %v2203_v13 = vpop.eup %1540  ;;  %1560 = vpow2.f32 %v1097_v48  ;;  %v2328_v2 = vpack.c.bf16 %v2048_v63, %v2043_v34  ;;  %v2332_v48 = vld [vmem:[#allocation12_spill] sm:$0xff]  ;;  %v2333_v63 = vld [vmem:[#allocation9_spill] sm:$0xff] }
 0x2fe   : > { %v1140_v22 = vadd.f32 %v2175_v25, %v1139_v41  ;;  %v1162_v6 = vadd.f32 %v2139_v0, %v1161_v28  ;;  %1226 = vmatpush1.bf16.msra.mxu1 %v1195_v27  ;;  %1562 = vpow2.f32 %v1101_v35  ;;  %v1543_v42 = vpop.eup %1542  ;;  %v1217_v41 = vpack.c.bf16 %v1537_v12, %v2175_v25  ;;  %v2334_v27 = vld [vmem:[#allocation10_spill] sm:$0xff] }
 0x2ff   : > { %1227 = vmatprep.subr.bf16.mxu1 %v1194_v30  ;;  %1564 = vpow2.f32 %v1085_v56  ;;  %v1545_v7 = vpop.eup %1544  ;;  %v2327_v25 = vpack.c.bf16 %v2059_v16, %v2054_v61  ;;  %v2331_v16 = vld [vmem:[#allocation11_spill] sm:$0xff]  ;;  %v1204_v34 = vpack.c.bf16 %v2203_v13, %v2200_v47 }
 0x300   : > { %v2195_v10 = vadd.f32 %v1537_v12, %v1140_v22  ;;  %v1163_v38 = vadd.f32 %v2200_v47, %v1162_v6  ;;  %v1206_v61 = vpack.c.bf16 %v1545_v7, %v1543_v42  ;;  %v1205_v35 = vpack.c.bf16 %v2332_v48, %v2331_v16 }
 0x301   : > { %v1203_v6 = vpack.c.bf16 %v2334_v27, %v2333_v63 }
 0x302   : > { %v1164_v24 = vadd.f32 %v2203_v13, %v1163_v38  ;;  %1228 = vmatpush1.bf16.msra.mxu1 %v1193_v18 }
 0x303   : > { %1229 = vmatprep.subr.bf16.mxu1 %v1192_v36  ;;  %v1547_v59 = vpop.eup %1546 }
 0x304   : > { %v1165_v0 = vadd.f32 %v1543_v42, %v1164_v24  ;;  %v1549_v26 = vpop.eup %1548 }
 0x305   : > { %v1551_v50 = vpop.eup %1550  ;;  %v1208_v37 = vpack.c.bf16 %v1549_v26, %v1547_v59 }
 0x306   : > { %v1166_v58 = vadd.f32 %v1545_v7, %v1165_v0  ;;  %1230 = vmatpush1.bf16.msra.mxu1 %v1191_v15  ;;  %v1553_v14 = vpop.eup %1552 }
 0x307   : > { %1231 = vmatprep.subr.bf16.mxu1 %v1190_v60  ;;  %v1555_v3 = vpop.eup %1554 }
 0x308   : > { %v1167_v44 = vadd.f32 %v1547_v59, %v1166_v58  ;;  %v1557_v52 = vpop.eup %1556  ;;  %v1218_v21 = vpack.c.bf16 %v1555_v3, %v1553_v14 }
 0x309   : > { %v1559_v62 = vpop.eup %1558  ;;  %v1210_v12 = vpack.c.bf16 %v1557_v52, %v1551_v50 }
 0x30a   : > { %v1168_v19 = vadd.f32 %v1549_v26, %v1167_v44  ;;  %1232 = vmatpush1.bf16.msra.mxu1 %v1189_v29  ;;  %v1561_v17 = vpop.eup %1560 }
 0x30b   : > { %1233 = vmatprep.subr.bf16.mxu1 %v1188_v1  ;;  %v1563_v57 = vpop.eup %1562 }
 0x30c   : > { %v1169_v20 = vadd.f32 %v1551_v50, %v1168_v19  ;;  %v1565_v43 = vpop.eup %1564  ;;  %v1216_v54 = vpack.c.bf16 %v1563_v57, %v1561_v17 }
 0x30d   : > { %v1212_v11 = vpack.c.bf16 %v1565_v43, %v1559_v62 }
 0x30e   : > { %v1170_v9 = vadd.f32 %v1557_v52, %v1169_v20  ;;  %1234 = vmatpush1.bf16.msra.mxu1 %v1187_v49 }
 0x30f   : > { %1235 = vmatprep.subr.bf16.mxu1 %v1218_v21 }
 0x310   : > { %v1171_v53 = vadd.f32 %v1559_v62, %v1170_v9 }
 0x312   : > { %v1172_v4 = vadd.f32 %v1565_v43, %v1171_v53  ;;  %1236 = vmatpush2.bf16.msra.mxu1 %v1217_v41 }
 0x313   : > { %1237 = vmatprep.subr.bf16.mxu1 %v1216_v54 }
 0x314   : > { %v1173_v31 = vadd.f32 %v2181_v23, %v1172_v4  ;;  %v2329_v23 = vpack.c.bf16 %v2037_v39, %v2032_v45  ;;  %v2335_v45 = vld [vmem:[#allocation2_spill] sm:$0xff] }
 0x315   : > { %v1185_v39 = vpack.c.bf16 %v2335_v45, %v2335_v45 }
 0x316   : > { %v1174_v51 = vadd.f32 %v2185_v32, %v1173_v31  ;;  %1238 = vmatpush2.bf16.msra.mxu1 %v1215_v40  ;;  %v2330_v32 = vld [vmem:[#allocation13_spill] sm:$0xff] }
 0x317   : > { %1239 = vmatprep.subr.bf16.mxu1 %v1214_v55  ;;  %v1207_v55 = vpack.c.bf16 %v2330_v32, %v2095_v46  ;;  %v1142_v46 = vrot.slane %v2195_v10, 4 }
 0x318   : > { %v1175_v5 = vadd.f32 %v1561_v17, %v1174_v51 }
 0x319   : > { %v1143_v56 = vadd.f32 %v1142_v46, %v2195_v10 }
 0x31a   : > { %v1176_v8 = vadd.f32 %v1563_v57, %v1175_v5  ;;  %1240 = vmatpush2.bf16.msra.mxu1 %v2327_v25 }
 0x31b   : > { %1241 = vmatprep.subr.bf16.mxu1 %v1212_v11  ;;  %v1144_v18 = vrot.slane %v1143_v56, 2 }
 0x31c   : > { %v1177_v22 = vadd.f32 %v1553_v14, %v1176_v8 }
 0x31d   : > { %v1145_v47 = vadd.f32 %v1144_v18, %v1143_v56 }
 0x31e   : > { %v1178_v28 = vadd.f32 %v1555_v3, %v1177_v22  ;;  %1242 = vmatpush2.bf16.msra.mxu1 %v2328_v2 }
 0x31f   : > { %1243 = vmatprep.subr.bf16.mxu1 %v1210_v12  ;;  %v1146_v36 = vrot.slane %v1145_v47, 1 }
 0x320   : > { %v1179_v30 = vrot.slane %v1178_v28, 4 }
 0x321   : > { %v1147_v0 = vadd.f32 %v1146_v36, %v1145_v47 }
 0x322   : > { %1244 = vmatpush2.bf16.msra.mxu1 %v2329_v23  ;;  %v1180_v38 = vadd.f32 %v1179_v30, %v1178_v28 }
 0x323   : > { %1245 = vmatprep.subr.bf16.mxu1 %v1208_v37  ;;  %1566 = vrcp.f32 %v1147_v0 }
 0x324   : > { %v1181_v24 = vrot.slane %v1180_v38, 2 }
 0x326   : > { %1246 = vmatpush2.bf16.msra.mxu1 %v1207_v55  ;;  %v1182_v13 = vadd.f32 %v1181_v24, %v1180_v38 }
 0x327   : > { %1247 = vmatprep.subr.bf16.mxu1 %v1206_v61 }
 0x328   : > { %v1183_v42 = vrot.slane %v1182_v13, 1 }
 0x32a   : > { %1248 = vmatpush2.bf16.msra.mxu1 %v1205_v35  ;;  %v1184_v7 = vadd.f32 %v1183_v42, %v1182_v13 }
 0x32b   : > { %1249 = vmatprep.subr.bf16.mxu1 %v1204_v34 }
 0x32c   : > { %1568 = vrcp.f32 %v1184_v7 }
 0x32e   : > { %1250 = vmatpush2.bf16.msra.mxu1 %v1203_v6 }
 0x330   : > { %v1567_v58 = vpop.eup %1566 }
 0x331   : > { %1252 = vmatmul.mubr.bf16.vlgmr.msra.gmra.mxu1 %v1185_v39 }
 0x339   : > { %v1569_v60 = vpop.eup %1568 }
 0x3f1   : > { %v1253_v15 = vpop.f32.mrf.mxu1 }
 0x3f2   : > { %v1262_v26 = vmul.f32 %v1567_v58, %v1253_v15 }
 0x3f3   : > { %v1255_v59 = vpop.f32.mrf.mxu1 }
 0x3f4   : > { %v1263_v44 = vmul.f32 %v1569_v60, %v1255_v59 }
 0x3f5   : > { %v1257_v10 = vpop.f32.mrf.mxu1 }
 0x3f6   : > { %v1266_v50 = vcombine.low %v1262_v26, %v1263_v44 }
 0x3f7   : > { %v1258_v29 = vpop.f32.mrf.mxu1 }
 0x3f8   : > { %1268 = vst [vmem:[%s282_s28] sm:$0xff] %v1266_v50 }
 0x3f9 PF: > { %s15_s20 = sadd.s32 1, %s1592_s20   ;;  %s2336_s18 = smov %s1588_s19 }
 0x3fa   : > { %p12_p5 = scmp.ge.s32.totalorder %s15_s20, 4   ;;  %s2337_s19 = smov %s2339_s21 }
 0x3fc   :  { %14 = sbr.rel (!%p12_p5) target bundleno = 2 (0x2), region = 73 }

</bundles_post_ra>
